<compile_context>
chip_gen: v7x
topology: tpu7x:2x2x1
jax: 0.10.0
libtpu: 0.0.40
codegen_flags: <defaults>
</compile_context>

<pallas_src>
import functools

import jax
import jax.numpy as jnp
from jax.experimental import pallas as pl
from jax.experimental.pallas import tpu as pltpu


def _round_up(x, m):
    return ((x + m - 1) // m) * m


def _vmem_capacity_bytes():
    """Best-effort query of per-core VMEM capacity; conservative fallback."""
    try:
        info = pltpu.get_tpu_info()
        for name in ("vmem_capacity_bytes", "vmem_size_bytes", "vmem_bytes"):
            cap = getattr(info, name, None)
            if cap:
                return int(cap)
    except Exception:
        pass
    return 64 * 2**20  # conservative (v7x per-TensorCore)


# --------------------------------------------------------------------------- #
# Pass 1: x = GELU(LN(proj(cat(columns, logits))))   (row-tiled, per batch elem)
# --------------------------------------------------------------------------- #
def _proj_ln_gelu_kernel(xin_ref, w_ref, b_ref, g_ref, bt_ref, x_ref, *, H):
    xin = xin_ref[0]                                                  # (TN, Kp) f32
    x = jnp.dot(xin, w_ref[...], preferred_element_type=jnp.float32) + b_ref[...]
    Hp = x.shape[-1]
    inv_h = 1.0 / H
    # LayerNorm over the REAL H features only (padded cols of x are exactly 0).
    mu = jnp.sum(x, axis=-1, keepdims=True) * inv_h
    if H == Hp:
        d = x - mu
    else:
        col = jax.lax.broadcasted_iota(jnp.int32, (1, Hp), 1)
        d = (x - mu) * (col < H).astype(jnp.float32)
    var = jnp.sum(d * d, axis=-1, keepdims=True) * inv_h
    xh = (x - mu) * jax.lax.rsqrt(var + 1e-5)
    # gamma/beta are zero in padded columns -> padded columns of xh become 0.
    xh = xh * g_ref[...] + bt_ref[...]
    # Exact-erf GELU to match torch.nn.GELU default.
    xg = 0.5 * xh * (1.0 + jax.lax.erf(xh * 0.7071067811865475))
    # TODO(synk): nn.Dropout is stochastic at train time; identity (eval mode) here.
    x_ref[0] = xg.astype(x_ref.dtype)


# --------------------------------------------------------------------------- #
# Pass 2: adjacency aggregation + fused relation mixing (row-tiled)
# --------------------------------------------------------------------------- #
def _rgcn_agg_kernel(x_ref, adj_ref, m_ref, out_ref, *, R, Hp, TN):
    t = pl.program_id(1)
    row0 = pl.multiple_of(t * TN, TN)

    x_all = x_ref[0]                              # (Np, Hp) compute dtype
    x_rows = x_ref[0, pl.ds(row0, TN), :]         # (TN, Hp) compute dtype
    adj8 = adj_ref[0]                             # (TN, Np) int8/int32 (no upcast)

    # relation 0 is the identity adjacency -> support is x itself.
    acc = jnp.dot(x_rows, m_ref[0:Hp, :], preferred_element_type=jnp.float32)
    for r in range(1, R):
        a_r = (adj8 == r).astype(x_all.dtype)                         # (TN, Np)
        s_r = jnp.dot(a_r, x_all, preferred_element_type=jnp.float32)  # (TN, Hp)
        acc = acc + jnp.dot(s_r.astype(x_all.dtype),
                            m_ref[r * Hp:(r + 1) * Hp, :],
                            preferred_element_type=jnp.float32)
    # TODO(synk): trailing nn.Dropout also treated as identity (eval mode).
    out_ref[0] = acc.astype(out_ref.dtype)


# --------------------------------------------------------------------------- #
# Wrapper
# --------------------------------------------------------------------------- #
def rgcn_layer(columns, logits, adj, params, *,
               compute_dtype=jnp.bfloat16, tile_rows=None):
    B, N, H = columns.shape
    L = logits.shape[-1]
    R = params["V"].shape[0]
    cdt = jnp.dtype(compute_dtype)

    Hp = _round_up(H, 128)                  # lane-dense hidden dim
    Kin = H + L
    Kp = _round_up(Kin, 128)                # lane-dense projection input dim

    vmem_cap = _vmem_capacity_bytes()
    if tile_rows is None:
        # 64 MiB parts (v7x) -> 128-row tiles; 128 MiB parts (v5e/v6e) -> 256.
        tile_rows = 128 if vmem_cap <= 64 * 2**20 else 256
    tile_rows = max(128, (tile_rows // 128) * 128)

    Np = _round_up(N, 128)                  # lane-dense / sublane-aligned node dim
    TN = tile_rows if Np % tile_rows == 0 else 128
    n_tiles = Np // TN

    # ---- wrapper-side padding / parameter setup (cheap relative to adj traffic) ----
    xcat = jnp.concatenate([columns.astype(jnp.float32),
                            logits.astype(jnp.float32)], axis=-1)     # (B, N, Kin)
    xin = jnp.pad(xcat, ((0, 0), (0, Np - N), (0, Kp - Kin)))          # (B, Np, Kp)

    # adjacency: relation ids must lie in [0, R); pad value 0 == identity relation
    # (never compared).  int8 cuts HBM/VMEM traffic 4x.  Skip the pad copy if aligned.
    adj_dtype = jnp.int8 if R <= 127 else jnp.int32
    a_sz = jnp.dtype(adj_dtype).itemsize
    adj_c = adj.astype(adj_dtype)
    adj_p = adj_c if Np == N else jnp.pad(adj_c, ((0, 0), (0, Np - N), (0, Np - N)))

    Wt = jnp.zeros((Kp, Hp), jnp.float32).at[:Kin, :H].set(params["proj_w"].T)
    bias = jnp.zeros((1, Hp), jnp.float32).at[0, :H].set(params["proj_b"])
    gamma = jnp.zeros((1, Hp), jnp.float32).at[0, :H].set(params["ln_g"])
    beta = jnp.zeros((1, Hp), jnp.float32).at[0, :H].set(params["ln_b"])

    # fused relation-mixing weight: M[r] = V[r] @ W  (== torch.matmul(V, W).permute(1,0,2))
    M = jnp.einsum("rk,ikj->rij", params["V"], params["W"])            # (R, H, H)
    M_flat = (jnp.zeros((R, Hp, Hp), jnp.float32).at[:, :H, :H].set(M)
              .reshape(R * Hp, Hp).astype(cdt))

    c_sz = cdt.itemsize

    # ------------------------------ pass 1: projection ------------------------------
    proj_cost = pl.CostEstimate(
        flops=int(2 * B * Np * Kp * Hp),
        transcendentals=int(B * Np * Hp),
        bytes_accessed=int(B * Np * Kp * 4 + (Kp * Hp + 3 * Hp) * 4 + B * Np * Hp * c_sz),
    )
    x_pad = pl.pallas_call(
        functools.partial(_proj_ln_gelu_kernel, H=H),
        out_shape=jax.ShapeDtypeStruct((B, Np, Hp), cdt),
        grid_spec=pltpu.PrefetchScalarGridSpec(
            num_scalar_prefetch=0,
            grid=(B, n_tiles),
            in_specs=[
                pl.BlockSpec((1, TN, Kp), lambda b, t: (b, t, 0)),   # cat(columns, logits)
                pl.BlockSpec((Kp, Hp), lambda b, t: (0, 0)),         # proj weight
                pl.BlockSpec((1, Hp), lambda b, t: (0, 0)),          # proj bias
                pl.BlockSpec((1, Hp), lambda b, t: (0, 0)),          # ln gamma
                pl.BlockSpec((1, Hp), lambda b, t: (0, 0)),          # ln beta
            ],
            out_specs=pl.BlockSpec((1, TN, Hp), lambda b, t: (b, t, 0)),
        ),
        compiler_params=pltpu.CompilerParams(
            dimension_semantics=("parallel", "parallel")),
        cost_estimate=proj_cost,
    )(xin, Wt, bias, gamma, beta)

    # --------------------------- pass 2: aggregation + mixing -----------------------
    # Honest VMEM budget (blocks already include double buffering; no extra 2x),
    # capped at 0.85 * physical/queried VMEM so v7x's 64 MiB is never exceeded.
    # Note: M_flat has a constant index map; single-buffering it (pl.Buffered(1))
    # would save another R*Hp*Hp*c_sz bytes.
    block_bytes = (2 * Np * Hp * c_sz          # x (double-buffered across batch)
                   + 2 * TN * Np * a_sz        # adj row tile
                   + 2 * R * Hp * Hp * c_sz    # fused mixing weight
                   + 2 * TN * Hp * 4)          # output tile
    temp_bytes = 2 * TN * Np * c_sz + 6 * TN * Hp * 4   # relation mask + acc/s_r temps
    need = block_bytes + temp_bytes
    vmem_limit = int(min(0.85 * vmem_cap, max(32 * 2**20, need + (4 << 20))))

    agg_cost = pl.CostEstimate(
        flops=int(2 * B * ((R - 1) * Np * Np * Hp + R * Np * Hp * Hp)),
        transcendentals=0,
        bytes_accessed=int(B * Np * Np * a_sz + B * Np * Hp * c_sz
                           + R * Hp * Hp * c_sz + B * Np * Hp * 4),
    )

    out_p = pl.pallas_call(
        functools.partial(_rgcn_agg_kernel, R=R, Hp=Hp, TN=TN),
        out_shape=jax.ShapeDtypeStruct((B, Np, Hp), columns.dtype),
        grid_spec=pltpu.PrefetchScalarGridSpec(
            num_scalar_prefetch=0,
            grid=(B, n_tiles),
            in_specs=[
                pl.BlockSpec((1, Np, Hp), lambda b, t: (b, 0, 0)),    # x (per batch elem)
                pl.BlockSpec((1, TN, Np), lambda b, t: (b, t, 0)),    # adj row tile (int8)
                pl.BlockSpec((R * Hp, Hp), lambda b, t: (0, 0)),      # fused M = V@W
            ],
            out_specs=pl.BlockSpec((1, TN, Hp), lambda b, t: (b, t, 0)),
        ),
        compiler_params=pltpu.CompilerParams(
            dimension_semantics=("parallel", "parallel"),
            vmem_limit_bytes=vmem_limit,
        ),
        cost_estimate=agg_cost,
    )(x_pad, adj_p, M_flat)

    return out_p[:, :N, :H]


# --------------------------------------------------------------------------- #
# Pure-JAX reference mirroring the PyTorch forward (dropout = identity)
# --------------------------------------------------------------------------- #
def rgcn_reference(columns, logits, adj, params):
    R = params["V"].shape[0]
    xcat = jnp.concatenate([columns, logits], axis=-1)
    x = xcat @ params["proj_w"].T + params["proj_b"]
    mu = jnp.mean(x, axis=-1, keepdims=True)
    var = jnp.mean((x - mu) ** 2, axis=-1, keepdims=True)
    x = (x - mu) / jnp.sqrt(var + 1e-5) * params["ln_g"] + params["ln_b"]
    x = jax.nn.gelu(x, approximate=False)
    supports = [x[:, None]]
    for r in range(1, R):
        a = (adj == r).astype(x.dtype)
        supports.append(jnp.einsum("bnm,bmh->bnh", a, x)[:, None])
    supports = jnp.concatenate(supports, axis=1)                       # (B, R, N, H)
    M = jnp.einsum("rk,ikj->rij", params["V"], params["W"])            # (R, H, H)
    out = jnp.einsum("brnh,rhj->brnj", supports, M)
    return jnp.sum(out, axis=1)


def init_params(key, hidden_dim, relation_num):
    k1, k2, k3, k4 = jax.random.split(key, 4)
    H, R = hidden_dim, relation_num
    proj_w = jax.random.normal(k1, (H, H + 2), jnp.float32) / jnp.sqrt(H + 2.0)
    proj_b = jax.random.normal(k2, (H,), jnp.float32) * 0.01
    std_w = (2.0 / (3 * H + H * H)) ** 0.5
    std_v = (2.0 / (3 + R)) ** 0.5
    W = jax.random.normal(k3, (H, 3, H), jnp.float32) * std_w
    V = jax.random.normal(k4, (R, 3), jnp.float32) * std_v
    return {
        "proj_w": proj_w, "proj_b": proj_b,
        "ln_g": jnp.ones((H,), jnp.float32), "ln_b": jnp.zeros((H,), jnp.float32),
        "W": W, "V": V,
    }


if __name__ == "__main__":
    B, N, H, R = 2, 8, 32, 4

    key = jax.random.PRNGKey(0)
    kparam, kc, kl, ka = jax.random.split(key, 4)
    params = init_params(kparam, H, R)

    columns = jax.random.normal(kc, (B, N, H), jnp.float32)
    logits = jax.random.normal(kl, (B, N, 2), jnp.float32)
    adj = jax.random.randint(ka, (B, N, N), 0, R, jnp.int32)   # relation ids in [0, R)

    ref = jax.block_until_ready(rgcn_reference(columns, logits, adj, params))

    # f32 compute path: strict check against the reference.
    out_f32 = jax.block_until_ready(
        rgcn_layer(columns, logits, adj, params, compute_dtype=jnp.float32))
    assert out_f32.shape == (B, N, H)
    err = float(jnp.max(jnp.abs(out_f32 - ref)))
    assert jnp.allclose(out_f32, ref, rtol=1e-4, atol=1e-4), f"f32 max abs err {err}"

    # bf16 compute path (default; full-rate MXU, half the VMEM/HBM traffic): looser check.
    out_bf16 = jax.block_until_ready(rgcn_layer(columns, logits, adj, params))
    assert out_bf16.shape == (B, N, H)
    err_bf = float(jnp.max(jnp.abs(out_bf16 - ref)))
    assert jnp.allclose(out_bf16, ref, rtol=5e-2, atol=5e-2), f"bf16 max abs err {err_bf}"

    print("KERNEL_OK")
</pallas_src>

<mosaic_0001>
module attributes {stable_mosaic.version = 11 : i64} {
  func.func @_proj_ln_gelu_kernel(%arg0: i32, %arg1: i32, %arg2: memref<1x128x128xf32, #tpu.memory_space<vmem>>, %arg3: memref<128x128xf32, #tpu.memory_space<vmem>>, %arg4: memref<1x128xf32, #tpu.memory_space<vmem>>, %arg5: memref<1x128xf32, #tpu.memory_space<vmem>>, %arg6: memref<1x128xf32, #tpu.memory_space<vmem>>, %arg7: memref<1x128x128xf32, #tpu.memory_space<vmem>>) attributes {dimension_semantics = [#tpu.dimension_semantics<parallel>, #tpu.dimension_semantics<parallel>], iteration_bounds = array<i64: 2, 1>, scalar_prefetch = 0 : i64, scratch_operands = 0 : i64, tpu.core_type = #tpu.core_type<tc>, window_params = [{transform_indices = @transform_0, window_bounds = array<i64: 1, 128, 128>}, {pipeline_mode = #tpu.pipeline_mode<synchronous>, transform_indices = @transform_1, window_bounds = array<i64: 128, 128>}, {pipeline_mode = #tpu.pipeline_mode<synchronous>, transform_indices = @transform_2, window_bounds = array<i64: 1, 128>}, {pipeline_mode = #tpu.pipeline_mode<synchronous>, transform_indices = @transform_3, window_bounds = array<i64: 1, 128>}, {pipeline_mode = #tpu.pipeline_mode<synchronous>, transform_indices = @transform_4, window_bounds = array<i64: 1, 128>}, {transform_indices = @transform_5, window_bounds = array<i64: 1, 128, 128>}]} {
    %c0 = arith.constant 0 : index
    %c0_0 = arith.constant 0 : index
    %c0_1 = arith.constant 0 : index
    %0 = vector.load %arg2[%c0, %c0_0, %c0_1] : memref<1x128x128xf32, #tpu.memory_space<vmem>>, vector<1x128x128xf32>
    %1 = vector.shape_cast %0 : vector<1x128x128xf32> to vector<128x128xf32>
    %c0_2 = arith.constant 0 : index
    %c0_3 = arith.constant 0 : index
    %2 = vector.load %arg3[%c0_2, %c0_3] : memref<128x128xf32, #tpu.memory_space<vmem>>, vector<128x128xf32>
    %cst = arith.constant dense<0.000000e+00> : vector<128x128xf32>
    %3 = tpu.matmul %1, %2, %cst {dimension_numbers = #tpu.dot_dimension_numbers<[1], [0], [0], [1], [0, 0, 1, 1], [], []>} : vector<128x128xf32>, vector<128x128xf32>, vector<128x128xf32> -> vector<128x128xf32>
    %c0_4 = arith.constant 0 : index
    %c0_5 = arith.constant 0 : index
    %4 = vector.load %arg4[%c0_4, %c0_5] : memref<1x128xf32, #tpu.memory_space<vmem>>, vector<1x128xf32>
    %5 = vector.broadcast %4 : vector<1x128xf32> to vector<128x128xf32>
    %6 = arith.addf %3, %5 : vector<128x128xf32>
    %cst_6 = arith.constant dense<0.000000e+00> : vector<128xf32>
    %7 = vector.multi_reduction <add>, %6, %cst_6 [1] : vector<128x128xf32> to vector<128xf32>
    %8 = vector.shape_cast %7 : vector<128xf32> to vector<128x1xf32>
    %cst_7 = arith.constant 3.125000e-02 : f32
    %9 = vector.broadcast %cst_7 : f32 to vector<128x1xf32>
    %10 = arith.mulf %8, %9 : vector<128x1xf32>
    %11 = tpu.iota {dimensions = array<i32: 1>} : vector<1x128xi32>
    %12 = vector.broadcast %10 : vector<128x1xf32> to vector<128x128xf32>
    %13 = arith.subf %6, %12 : vector<128x128xf32>
    %c32_i32 = arith.constant 32 : i32
    %14 = vector.broadcast %c32_i32 : i32 to vector<1x128xi32>
    %15 = arith.cmpi slt, %11, %14 : vector<1x128xi32>
    %16 = arith.extui %15 : vector<1x128xi1> to vector<1x128xi32>
    %17 = arith.sitofp %16 : vector<1x128xi32> to vector<1x128xf32>
    %18 = vector.broadcast %17 : vector<1x128xf32> to vector<128x128xf32>
    %19 = arith.mulf %13, %18 : vector<128x128xf32>
    %20 = arith.mulf %19, %19 : vector<128x128xf32>
    %cst_8 = arith.constant dense<0.000000e+00> : vector<128xf32>
    %21 = vector.multi_reduction <add>, %20, %cst_8 [1] : vector<128x128xf32> to vector<128xf32>
    %22 = vector.shape_cast %21 : vector<128xf32> to vector<128x1xf32>
    %cst_9 = arith.constant 3.125000e-02 : f32
    %23 = vector.broadcast %cst_9 : f32 to vector<128x1xf32>
    %24 = arith.mulf %22, %23 : vector<128x1xf32>
    %25 = vector.broadcast %10 : vector<128x1xf32> to vector<128x128xf32>
    %26 = arith.subf %6, %25 : vector<128x128xf32>
    %cst_10 = arith.constant 9.99999974E-6 : f32
    %27 = vector.broadcast %cst_10 : f32 to vector<128x1xf32>
    %28 = arith.addf %24, %27 : vector<128x1xf32>
    %29 = math.rsqrt %28 : vector<128x1xf32>
    %30 = vector.broadcast %29 : vector<128x1xf32> to vector<128x128xf32>
    %31 = arith.mulf %26, %30 : vector<128x128xf32>
    %c0_11 = arith.constant 0 : index
    %c0_12 = arith.constant 0 : index
    %32 = vector.load %arg5[%c0_11, %c0_12] : memref<1x128xf32, #tpu.memory_space<vmem>>, vector<1x128xf32>
    %33 = vector.broadcast %32 : vector<1x128xf32> to vector<128x128xf32>
    %34 = arith.mulf %31, %33 : vector<128x128xf32>
    %c0_13 = arith.constant 0 : index
    %c0_14 = arith.constant 0 : index
    %35 = vector.load %arg6[%c0_13, %c0_14] : memref<1x128xf32, #tpu.memory_space<vmem>>, vector<1x128xf32>
    %36 = vector.broadcast %35 : vector<1x128xf32> to vector<128x128xf32>
    %37 = arith.addf %34, %36 : vector<128x128xf32>
    %cst_15 = arith.constant 5.000000e-01 : f32
    %38 = vector.broadcast %cst_15 : f32 to vector<128x128xf32>
    %39 = arith.mulf %38, %37 : vector<128x128xf32>
    %cst_16 = arith.constant 0.707106769 : f32
    %40 = vector.broadcast %cst_16 : f32 to vector<128x128xf32>
    %41 = arith.mulf %37, %40 : vector<128x128xf32>
    %42 = math.erf %41 : vector<128x128xf32>
    %cst_17 = arith.constant 1.000000e+00 : f32
    %43 = vector.broadcast %cst_17 : f32 to vector<128x128xf32>
    %44 = arith.addf %43, %42 : vector<128x128xf32>
    %45 = arith.mulf %39, %44 : vector<128x128xf32>
    %c0_18 = arith.constant 0 : index
    %c0_19 = arith.constant 0 : index
    %c0_20 = arith.constant 0 : index
    %46 = vector.load %arg7[%c0_18, %c0_19, %c0_20] : memref<1x128x128xf32, #tpu.memory_space<vmem>>, vector<1x128x128xf32>
    %47 = vector.shape_cast %46 : vector<1x128x128xf32> to vector<128x128xf32>
    %48 = vector.shape_cast %45 : vector<128x128xf32> to vector<1x128x128xf32>
    tpu.vector_store %arg7[%c0_18, %c0_19, %c0_20], %48 {strides = array<i32>} : memref<1x128x128xf32, #tpu.memory_space<vmem>>, vector<1x128x128xf32>,
    return
  }
  func.func @transform_0(%arg0: i32, %arg1: i32) -> (i32, i32, i32) {
    %c0_i32 = arith.constant 0 : i32
    %c0_i32_0 = arith.constant 0 : i32
    return %arg0, %arg1, %c0_i32 : i32, i32, i32
  }
  func.func @transform_1(%arg0: i32, %arg1: i32) -> (i32, i32) {
    %c0_i32 = arith.constant 0 : i32
    %c0_i32_0 = arith.constant 0 : i32
    %c0_i32_1 = arith.constant 0 : i32
    return %c0_i32, %c0_i32_0 : i32, i32
  }
  func.func @transform_2(%arg0: i32, %arg1: i32) -> (i32, i32) {
    %c0_i32 = arith.constant 0 : i32
    %c0_i32_0 = arith.constant 0 : i32
    %c0_i32_1 = arith.constant 0 : i32
    return %c0_i32, %c0_i32_0 : i32, i32
  }
  func.func @transform_3(%arg0: i32, %arg1: i32) -> (i32, i32) {
    %c0_i32 = arith.constant 0 : i32
    %c0_i32_0 = arith.constant 0 : i32
    %c0_i32_1 = arith.constant 0 : i32
    return %c0_i32, %c0_i32_0 : i32, i32
  }
  func.func @transform_4(%arg0: i32, %arg1: i32) -> (i32, i32) {
    %c0_i32 = arith.constant 0 : i32
    %c0_i32_0 = arith.constant 0 : i32
    %c0_i32_1 = arith.constant 0 : i32
    return %c0_i32, %c0_i32_0 : i32, i32
  }
  func.func @transform_5(%arg0: i32, %arg1: i32) -> (i32, i32, i32) {
    %c0_i32 = arith.constant 0 : i32
    %c0_i32_0 = arith.constant 0 : i32
    return %arg0, %arg1, %c0_i32 : i32, i32, i32
  }
}

</mosaic_0001>

<bundles_post_ra>
// kernel: tpu_custom_call.1
= control target key start
LH: loop header
LB: loop body
LE: loop exit
PB: predicated region body
PF: predicated region fallthrough
CT: control target
= control target key end

     0   :  { %10 = vsyncpa [#allocation3], 0  ;;  %s1860_s0 = inlined_call_operand.hbm [shape: f32[2,128,128], index: 0, kind: input, shape index: {}]   ;;  %s1861_s1 = inlined_call_operand.hbm [shape: f32[128,128], index: 1, kind: input, shape index: {}]   ;;  %s1862_s2 = inlined_call_operand.vmem [shape: f32[1,128], index: 2, kind: input, shape index: {}]   ;;  %s1863_s3 = inlined_call_operand.vmem [shape: f32[1,128], index: 3, kind: input, shape index: {}]   ;;  %s1864_s4 = inlined_call_operand.vmem [shape: f32[1,128], index: 4, kind: input, shape index: {}]   ;;  %s1865_s5 = inlined_call_operand.hbm [shape: f32[2,128,128], index: 5, kind: output, shape index: {}]  }
   0x1   :  { %12 = vsyncpa [#allocation3 + $0x1], 0 }
   0x2   :  { %13 = vsyncpa [#allocation6], 0 }
   0x3   :  { %14 = vsyncpa [#allocation4], 0 }
   0x4   :  { %16 = vsyncpa [#allocation4 + $0x1], 0  ;;  %s1399_s18 = smov 0   ;;  %s1401_s19 = smov 0  }
   0x5   :  { %s1403_s20 = smov 0   ;;  %s1405_s21 = smov 0  }
   0x6   :  { %s1407_s22 = smov 0   ;;  %s1409_s23 = smov 0  }
   0x7 LB: > { %s914_s24 = sadd.s32 4294967295, %s1359_s23   ;;  %s915_s25 = sadd.s32 4294967294, %s1359_s23   ;;  %s1359_s23 = sphi %s1409_s23, %s22_s23   ;;  %s1355_s22 = sphi %s1407_s22, %s1891_s22   ;;  %s1351_s21 = sphi %s1405_s21, %s1890_s21   ;;  %s1347_s20 = sphi %s1403_s20, %s1889_s20   ;;  %s1343_s19 = sphi %s1401_s19, %s1888_s19   ;;  %s1339_s18 = sphi %s1399_s18, %s1887_s18  }
   0x8   : > { %p56_p0 = scmp.ne.s32.totalorder %s1343_s19, %s1339_s18  ;;  %p1433_p1 = scmp.eq.s32.totalorder %s914_s24, 0 }
   0x9   : > { %p1437_p2 = scmp.eq.s32.totalorder %s914_s24, 1  ;;  %p172_p3 = scmp.eq.s32.totalorder %s915_s25, 1 }
   0xa   : > { %s1871_s26 = scalar_select %p1433_p1, 1, 0 }
   0xb   : > { %s1872_s27 = scalar_select %p1437_p2, 1, 0 }
   0xc   : > { %p1443_p4 = por %p1433_p1, %p56_p0  ;;  %p916_p5 = scmp.ge.s32.totalorder %s1359_s23, 1 }
   0xd   : > { %p1448_p6 = por %p172_p3, %p56_p0  ;;  %p179_p7 = scmp.lt.s32.totalorder %s1359_s23, 3 }
   0xe   : > { %s1873_s28 = scalar_select %p1443_p4, 1, 0 }
   0xf   : > { %s1874_s29 = scalar_select %p1448_p6, 1, 0 }
  0x10   : > { %p1453_p8 = pnand %p916_p5, %p179_p7  ;;  %s1361_s6 = smov [#allocation5]  }
  0x11   : > { %s191_s7 = sshll.u32 %s1361_s6, 4  ;;  %s34_s9 = sadd.s32 1, %s1355_s22  ;;  %s192_s7 = int_to_ptr.vmem [resolvable:$true] %s191_s7 }
  0x12   : > { %s1875_s30 = scalar_select %p1453_p8, 1, 0 }
  0x13   : > { %p1081_p9 = pneg %p1453_p8  ;;  %s1215_s12 = scalar_lea.hbm %s1861_s1, 2048 }
  0x14   : > { %p1216_p12 = scmp.ne.s32.totalorder %s1861_s1, %s1215_s12  ;;  %p1222_p5 = scmp.lt.u32.totalorder %s1215_s12, %s1861_s1 }
  0x15   : > { %p1462_p11 = pnand %p1081_p9, %p1433_p1 }
  0x17   : > { %p1217_p13 = pneg %p1462_p11 }
  0x19   : > { %p1218_p0 = pnand %p1217_p13, %p1216_p12 }
  0x1b   : > { %p1219_p3 = pneg %p1218_p0 }
  0x1d   : > { %p1224_p7 = pnand %p1222_p5, %p1219_p3 }
  0x1f   : > { %1227 = shalt.err (!%p1224_p7)
}
  0x20   : > { %s1228_s17 = scalar_lea.vmem %s192_s7, 2048  ;;  %p1236_p1 = scmp.lt.s32.totalorder %s192_s7, %s192_s7 }
  0x21   : > { %p1229_p9 = scmp.ne.s32.totalorder %s192_s7, %s1228_s17  ;;  %p1237_p4 = scmp.lt.s32.totalorder %s1228_s17, %s1228_s17 }
  0x23   : > { %p1231_p10 = pnand %p1229_p9, %p1217_p13  ;;  %p1238_p8 = por %p1237_p4, %p1236_p1 }
  0x25   : > { %p1232_p6 = pneg %p1231_p10 }
  0x27   : > { %p1239_p2 = pnand %p1238_p8, %p1232_p6 }
  0x29   : > { %1242 = shalt.err (!%p1239_p2)
}
  0x2a   : > { %s1870_s24 = smov 128   ;;  %s1363_s25 = smov 8  }
  0x2b   : > { %1084 = dma.hbm_to_vmem [thread:$0]  (!%p1462_p11), %s1861_s1, 2048, %s192_s7, [#allocation6], %s1870_s24, %s1870_s24, %s1363_s25  }
  0x2c   : > { %p36_p1 = scmp.ge.s32.totalorder %s34_s9, 2  ;;  %s43_s11 = sadd.s32 1, %s1347_s20 }
  0x2d   : > { %p50_p2 = scmp.ne.s32.totalorder %s1347_s20, %s1343_s19  ;;  %p51_p4 = scmp.eq.s32.totalorder %s1359_s23, 0 }
  0x2e   : > { %s1893_s9 = smov (%p36_p1, %s34_s9), 0  ;;  %p1878_p8 = scmp.ne.s32.totalorder %s1872_s27, 0 }
  0x2f   : > { %p1492_p6 = por %p51_p4, %p50_p2  ;;  %s38_s13 = ssub.s32 %s1355_s22, %s1893_s9 }
  0x30   : > { %p1498_p10 = por %p1878_p8, %p50_p2  ;;  %p1094_p12 = scmp.lt.s32.totalorder %s1359_s23, 2 }
  0x31   : > { %p41_p11 = scmp.eq.s32.totalorder %s38_s13, 0  ;;  %s214_s7 = sand.u32 1, %s1347_s20  }
  0x32   : > { %s919_s14 = sshll.u32 %s214_s7, 7  ;;  %s935_s16 = sshll.u32 %s1355_s22, 11 }
  0x33   : > { %s1507_s15 = scalar_select %p41_p11, %s1347_s20, %s43_s11  }
  0x34   : > { %s1513_s10 = scalar_lea.hbm %s1860_s0, %s935_s16  ;;  %s218_s27 = scalar_lea.vmem [#allocation2], %s919_s14 }
  0x35   : > { %s227_s24 = sshll.u32 %s218_s27, 4  ;;  %p1519_p13 = pnand %p1094_p12, %p1492_p6  ;;  %s1515_s24 = int_to_ptr.vmem [resolvable:$true] %s227_s24 }
  0x36   : > { %s1523_s11 = scalar_lea.sflag [#allocation3], %s214_s7  ;;  %s1243_s17 = scalar_lea.hbm %s1513_s10, 2048 }
  0x37   : > { %p1244_p0 = scmp.ne.s32.totalorder %s1513_s10, %s1243_s17  ;;  %p1245_p3 = pneg %p1519_p13 }
  0x38   : > { %s1248_s12 = scalar_lea.hbm %s1860_s0, 4096  ;;  %p1249_p9 = scmp.lt.u32.totalorder %s1513_s10, %s1860_s0 }
  0x39   : > { %p1246_p5 = pnand %p1245_p3, %p1244_p0  ;;  %p1250_p1 = scmp.lt.u32.totalorder %s1248_s12, %s1243_s17 }
  0x3a   : > { %p1252_p4 = scmp.lt.u32.totalorder %s1243_s17, %s1513_s10 }
  0x3b   : > { %p1247_p7 = pneg %p1246_p5  ;;  %p1251_p2 = por %p1250_p1, %p1249_p9 }
  0x3d   : > { %p1253_p6 = por %p1252_p4, %p1251_p2 }
  0x3f   : > { %p1254_p8 = pnand %p1253_p6, %p1247_p7 }
  0x41   : > { %1257 = shalt.err (!%p1254_p8)
}
  0x42   : > { %s1258_s7 = scalar_lea.vmem %s1515_s24, 2048  ;;  %s1364_s14 = smov [#allocation2]  }
  0x43   : > { %p1259_p12 = scmp.ne.s32.totalorder %s1515_s24, %s1258_s7  ;;  %s1263_s16 = sshll.u32 %s1364_s14, 4  ;;  %s1264_s16 = int_to_ptr.vmem [resolvable:$false] %s1263_s16 }
  0x44   : > { %s1265_s6 = scalar_lea.vmem %s1264_s16, 4096  ;;  %p1266_p5 = scmp.lt.s32.totalorder %s1515_s24, %s1264_s16 }
  0x45   : > { %p1261_p11 = pnand %p1259_p12, %p1245_p3  ;;  %p1267_p9 = scmp.lt.s32.totalorder %s1265_s6, %s1258_s7 }
  0x47   : > { %p1262_p0 = pneg %p1261_p11  ;;  %p1268_p1 = por %p1267_p9, %p1266_p5 }
  0x49   : > { %p1269_p2 = pnand %p1268_p1, %p1262_p0 }
  0x4b   : > { %1272 = shalt.err (!%p1269_p2)
}
  0x4c   : > { %s1881_s17 = smov 128   ;;  %p1882_p3 = scmp.ne.s32.totalorder %s1875_s30, 0 }
  0x4d   : > { %1088 = dma.hbm_to_vmem [thread:$0]  (!%p1519_p13), %s1513_s10, 2048, %s1515_s24, %s1523_s11, %s1881_s17, %s1881_s17, %s1363_s25  }
  0x4e   : > { %239 = sbr.rel (%p1882_p3) target bundleno = 724 (0x2d4), region = 40  ;;  %s1557_s12 = sand.u32 (!%p1882_p3), 1, %s1343_s19  }
  0x4f   : > { %s923_s27 = sshll.u32 (!%p1882_p3), %s1557_s12, 7  ;;  %s242_s7 = scalar_lea.sflag (!%p1882_p3), [#allocation3], %s1557_s12 }
  0x50   : > { %s1563_s13 = scalar_lea.vmem (!%p1882_p3), [#allocation2], %s923_s27  ;;  %p1883_p7 = scmp.ne.s32.totalorder (!%p1882_p3), %s1873_s28, 0 }
  0x55   : > { %1326 = dma.done.wait (%p1883_p7), %s242_s7, 2048  }
  0x56   : > { %1328 = vsyncadd (%p1883_p7), %s242_s7, 4294965248  ;;  %p1884_p13 = scmp.ne.s32.totalorder %s1871_s26, 0 }
  0x58   : > { %1330 = dma.done.wait (%p1884_p13), [#allocation6], 2048  }
  0x59   : > { %1332 = vsyncadd (%p1884_p13), [#allocation6], 4294965248  ;;  %v294_v0 = vld [vmem:[#allocation5] sm:$0xff]  ;;  %v295_v1 = vld [vmem:[#allocation5 + $0x8] sm:$0xff]  ;;  %s1756_s11 = scalar_lea.vmem [#allocation7], %s923_s27  ;;  %s936_s14 = sshll.u32 %s1351_s21, 11 }
  0x5a   : > { %v296_v2 = vld [vmem:[#allocation5 + $0x10] sm:$0xff]  ;;  %v1025_v3 = vpack.c.bf16 %v295_v1, %v294_v0  ;;  %v297_v4 = vld [vmem:[#allocation5 + $0x18] sm:$0xff]  ;;  %v298_v6 = vld [vmem:[#allocation5 + $0x20] sm:$0xff]  ;;  %s817_s16 = sshll.u32 %s1756_s11, 4  ;;  %s1808_s27 = scalar_lea.hbm %s1865_s5, %s936_s14  ;;  %s1810_s16 = int_to_ptr.vmem [resolvable:$true] %s817_s16 }
  0x5b   : > { %v1029_v5 = vpack.c.bf16 %v297_v4, %v296_v2  ;;  %v299_v7 = vld [vmem:[#allocation5 + $0x28] sm:$0xff]  ;;  %v278_v9 = vld [vmem:[%s1563_s13] sm:$0xff]  ;;  %v300_v11 = vld [vmem:[#allocation5 + $0x30] sm:$0xff]  ;;  %s802_s7 = scalar_lea.sflag [#allocation4], %s1557_s12  ;;  %s1366_s21 = smov [#allocation7]  }
  0x5c   : > { %1026 = vmatprep.subr.bf16.mxu0 %v1025_v3  ;;  %1057 = vmatprep.subr.bf16.mxu1 %v1025_v3  ;;  %v1033_v8 = vpack.c.bf16 %v299_v7, %v298_v6  ;;  %v286_v10 = vld [vmem:[%s1563_s13 + $0x40] sm:$0xff]  ;;  %v301_v12 = vld [vmem:[#allocation5 + $0x38] sm:$0xff]  ;;  %v303_v15 = vld [vmem:[#allocation5 + $0x48] sm:$0xff]  ;;  %s1277_s26 = sshll.u32 %s1366_s21, 4  ;;  %s1278_s26 = int_to_ptr.vmem [resolvable:$false] %s1277_s26 }
  0x5d   : > { %1028 = vmatpush3.bf16.msra.mxu0 %v1025_v3  ;;  %1065 = vmatpush3.bf16.msra.mxu1 %v1025_v3  ;;  %v1037_v13 = vpack.c.bf16 %v301_v12, %v300_v11  ;;  %v302_v14 = vld [vmem:[#allocation5 + $0x40] sm:$0xff]  ;;  %v304_v17 = vld [vmem:[#allocation5 + $0x50] sm:$0xff]  ;;  %v305_v18 = vld [vmem:[#allocation5 + $0x58] sm:$0xff]  ;;  %s1279_s28 = scalar_lea.vmem %s1278_s26, 4096  ;;  %p1280_p12 = scmp.lt.s32.totalorder %s1810_s16, %s1278_s26 }
  0x5e   : > { %1030 = vmatprep.subr.bf16.mxu0 %v1029_v5  ;;  %1058 = vmatprep.subr.bf16.mxu1 %v1029_v5  ;;  %v1041_v16 = vpack.c.bf16 %v303_v15, %v302_v14  ;;  %v1045_v19 = vpack.c.bf16 %v305_v18, %v304_v17  ;;  %v306_v20 = vld [vmem:[#allocation5 + $0x60] sm:$0xff]  ;;  %v307_v21 = vld [vmem:[#allocation5 + $0x68] sm:$0xff]  ;;  %v308_v23 = vld [vmem:[#allocation5 + $0x70] sm:$0xff]  ;;  %v1365_v15 = vmov 0.0  }
  0x5f   : > { %1001 = vmatprep.mubr.f32.mxu0 %v278_v9  ;;  %1013 = vmatprep.mubr.f32.mxu1 %v286_v10  ;;  %v1049_v22 = vpack.c.bf16 %v307_v21, %v306_v20  ;;  %v309_v24 = vld [vmem:[#allocation5 + $0x78] sm:$0xff]  ;;  %v279_v26 = vld [vmem:[%s1563_s13 + $0x8] sm:$0xff]  ;;  %v280_v28 = vld [vmem:[%s1563_s13 + $0x10] sm:$0xff]  ;;  %v510_v9 = vlaneseq }
  0x60   : > { %v1053_v25 = vpack.c.bf16 %v309_v24, %v308_v23  ;;  %v287_v27 = vld [vmem:[%s1563_s13 + $0x48] sm:$0xff]  ;;  %v288_v29 = vld [vmem:[%s1563_s13 + $0x50] sm:$0xff]  ;;  %v281_v30 = vld [vmem:[%s1563_s13 + $0x18] sm:$0xff] }
  0x61   : > { %1032 = vmatpush3.bf16.msra.mxu0 %v1029_v5  ;;  %1066 = vmatpush3.bf16.msra.mxu1 %v1029_v5  ;;  %v289_v31 = vld [vmem:[%s1563_s13 + $0x58] sm:$0xff]  ;;  %v282_v32 = vld [vmem:[%s1563_s13 + $0x20] sm:$0xff]  ;;  %v283_v34 = vld [vmem:[%s1563_s13 + $0x28] sm:$0xff]  ;;  %v511_v10 = vand.u32 127, %v510_v9 }
  0x62   : > { %1034 = vmatprep.subr.bf16.mxu0 %v1033_v8  ;;  %1059 = vmatprep.subr.bf16.mxu1 %v1033_v8  ;;  %v290_v33 = vld [vmem:[%s1563_s13 + $0x60] sm:$0xff]  ;;  %v291_v35 = vld [vmem:[%s1563_s13 + $0x68] sm:$0xff]  ;;  %v284_v36 = vld [vmem:[%s1563_s13 + $0x30] sm:$0xff] }
  0x63   : > { %v292_v37 = vld [vmem:[%s1563_s13 + $0x70] sm:$0xff]  ;;  %v285_v38 = vld [vmem:[%s1563_s13 + $0x38] sm:$0xff]  ;;  %v926_v40 = vld [vmem:[%s1862_s2] ss:$0 sm:$0xff]  ;;  %vm528_vm0 = vcmp.lt.s32.totalorder %v511_v10, 32 }
  0x64   : > { %v293_v39 = vld [vmem:[%s1563_s13 + $0x78] sm:$0xff]  ;;  %s1273_s13 = scalar_lea.vmem %s1810_s16, 2048 }
  0x65   : > { %1036 = vmatpush3.bf16.msra.mxu0 %v1033_v8  ;;  %1067 = vmatpush3.bf16.msra.mxu1 %v1033_v8  ;;  %p1274_p4 = scmp.ne.s32.totalorder %s1810_s16, %s1273_s13  ;;  %p1281_p11 = scmp.lt.s32.totalorder %s1279_s28, %s1273_s13 }
  0x66   : > { %1038 = vmatprep.subr.bf16.mxu0 %v1037_v13  ;;  %1060 = vmatprep.subr.bf16.mxu1 %v1037_v13 }
  0x67   : > { %p1275_p6 = pnand %p1274_p4, %p1498_p10  ;;  %p1282_p0 = por %p1281_p11, %p1280_p12 }
  0x69   : > { %1040 = vmatpush3.bf16.msra.mxu0 %v1037_v13  ;;  %1068 = vmatpush3.bf16.msra.mxu1 %v1037_v13  ;;  %p1276_p8 = pneg %p1275_p6 }
  0x6a   : > { %1042 = vmatprep.subr.bf16.mxu0 %v1041_v16  ;;  %1061 = vmatprep.subr.bf16.mxu1 %v1041_v16 }
  0x6b   : > { %p1283_p5 = pnand %p1282_p0, %p1276_p8 }
  0x6d   : > { %1044 = vmatpush3.bf16.msra.mxu0 %v1041_v16  ;;  %1069 = vmatpush3.bf16.msra.mxu1 %v1041_v16  ;;  %v1616_v16 = vsel %vm528_vm0, 1.0, %v1365_v15 }
  0x6e   : > { %1046 = vmatprep.subr.bf16.mxu0 %v1045_v19  ;;  %1062 = vmatprep.subr.bf16.mxu1 %v1045_v19 }
  0x71   : > { %1048 = vmatpush3.bf16.msra.mxu0 %v1045_v19  ;;  %1070 = vmatpush3.bf16.msra.mxu1 %v1045_v19 }
  0x72   : > { %1050 = vmatprep.subr.bf16.mxu0 %v1049_v22  ;;  %1063 = vmatprep.subr.bf16.mxu1 %v1049_v22 }
  0x75   : > { %1052 = vmatpush3.bf16.msra.mxu0 %v1049_v22  ;;  %1071 = vmatpush3.bf16.msra.mxu1 %v1049_v22 }
  0x76   : > { %1054 = vmatprep.subr.bf16.mxu0 %v1053_v25  ;;  %1064 = vmatprep.subr.bf16.mxu1 %v1053_v25 }
  0x79   : > { %1056 = vmatpush3.bf16.msra.mxu0 %v1053_v25  ;;  %1072 = vmatpush3.bf16.msra.mxu1 %v1053_v25 }
  0x7c   : > { %1002 = vmatmul.mubr.f32.vlgmr.msra.gmra.mrb[0].mxu0 %v279_v26  ;;  %1014 = vmatmul.mubr.f32.vlgmr.msra.gmra.mrb[0].mxu1 %v287_v27 }
  0x7d   : > { %1004 = vmatprep.mubr.f32.mxu0 %v280_v28  ;;  %1016 = vmatprep.mubr.f32.mxu1 %v288_v29 }
  0x80   : > { %1005 = vmatmul.mubr.f32.gmra.mrb[2].mxu0 %v281_v30  ;;  %1017 = vmatmul.mubr.f32.gmra.mrb[2].mxu1 %v289_v31 }
  0x81   : > { %1007 = vmatprep.mubr.f32.mxu0 %v282_v32  ;;  %1019 = vmatprep.mubr.f32.mxu1 %v290_v33 }
  0x84   : > { %1008 = vmatmul.mubr.f32.gmra.mrb[4].mxu0 %v283_v34  ;;  %1020 = vmatmul.mubr.f32.gmra.mrb[4].mxu1 %v291_v35 }
  0x85   : > { %1010 = vmatprep.mubr.f32.mxu0 %v284_v36  ;;  %1022 = vmatprep.mubr.f32.mxu1 %v292_v37 }
  0x88   : > { %1011 = vmatmul.mubr.f32.gmra.mrb[6].mxu0 %v285_v38  ;;  %1023 = vmatmul.mubr.f32.gmra.mrb[6].mxu1 %v293_v39 }
 0x14f   : > { %v1003_v41 = vpop.f32.mrb[0].mxu0  ;;  %v1015_v42 = vpop.f32.mrb[0].mxu1 }
 0x150   : > { %v389_v43 = vadd.f32 %v1003_v41, %v926_v40  ;;  %v429_v44 = vadd.f32 %v1015_v42, %v926_v40  ;;  %v383_v45 = vpop.f32.mrb[1].mxu0  ;;  %v423_v46 = vpop.f32.mrb[1].mxu1 }
 0x151   : > { %v384_v49 = vadd.f32 %v926_v40, %v383_v45  ;;  %v424_v56 = vadd.f32 %v926_v40, %v423_v46 }
 0x152   : > { %480 = vadd.xlane.f32.xlu1 %v429_v44  ;;  %464 = vadd.xlane.f32.xlu0 %v389_v43 }
 0x153   : > { %v1006_v47 = vpop.f32.mrb[2].mxu0  ;;  %v1018_v48 = vpop.f32.mrb[2].mxu1 }
 0x154   : > { %v399_v50 = vadd.f32 %v1006_v47, %v926_v40  ;;  %v393_v51 = vpop.f32.mrb[3].mxu0  ;;  %v433_v52 = vpop.f32.mrb[3].mxu1  ;;  %v439_v53 = vadd.f32 %v1018_v48, %v926_v40 }
 0x155   : > { %v394_v61 = vadd.f32 %v926_v40, %v393_v51  ;;  %v434_v62 = vadd.f32 %v926_v40, %v433_v52 }
 0x156   : > { %468 = vadd.xlane.f32.xlu1 %v399_v50  ;;  %462 = vadd.xlane.f32.xlu0 %v384_v49 }
 0x157   : > { %v1009_v54 = vpop.f32.mrb[4].mxu0  ;;  %v1021_v55 = vpop.f32.mrb[4].mxu1 }
 0x158   : > { %v403_v57 = vpop.f32.mrb[5].mxu0  ;;  %v443_v58 = vpop.f32.mrb[5].mxu1  ;;  %v1592_v1 = vadd.f32 %v1009_v54, %v926_v40  ;;  %v1596_v3 = vadd.f32 %v1021_v55, %v926_v40 }
 0x159   : > { %v1594_v2 = vadd.f32 %v926_v40, %v403_v57  ;;  %v1600_v4 = vadd.f32 %v926_v40, %v443_v58 }
 0x15a   : > { %484 = vadd.xlane.f32.xlu1 %v439_v53  ;;  %478 = vadd.xlane.f32.xlu0 %v424_v56 }
 0x15b   : > { %v1012_v59 = vpop.f32.mrb[6].mxu0  ;;  %v1024_v60 = vpop.f32.mrb[6].mxu1 }
 0x15c   : > { %v413_v63 = vpop.f32.mrb[7].mxu0  ;;  %v453_v0 = vpop.f32.mrb[7].mxu1  ;;  %v1602_v5 = vadd.f32 %v1012_v59, %v926_v40  ;;  %v1608_v7 = vadd.f32 %v1024_v60, %v926_v40 }
 0x15d   : > { %v1606_v6 = vadd.f32 %v926_v40, %v413_v63  ;;  %v1612_v8 = vadd.f32 %v926_v40, %v453_v0 }
 0x15e   : > { %466 = vadd.xlane.f32.xlu1 %v394_v61  ;;  %482 = vadd.xlane.f32.xlu0 %v434_v62 }
 0x162   : > { %472 = vadd.xlane.f32.xlu1 %v1592_v1  ;;  %470 = vadd.xlane.f32.xlu0 %v1594_v2 }
 0x166   : > { %488 = vadd.xlane.f32.xlu1 %v1596_v3  ;;  %486 = vadd.xlane.f32.xlu0 %v1600_v4 }
 0x16a   : > { %476 = vadd.xlane.f32.xlu1 %v1602_v5  ;;  %474 = vadd.xlane.f32.xlu0 %v1606_v6 }
 0x16e   : > { %492 = vadd.xlane.f32.xlu1 %v1608_v7  ;;  %490 = vadd.xlane.f32.xlu0 %v1612_v8 }
 0x1df   : > { %v481_v11 = vpop.xlane.xlu1 %480  ;;  %v465_v12 = vpop.xlane.xlu0 %464 }
 0x1e0   : > { %v503_v13 = vmul.f32 0.03125, %v481_v11  ;;  %v495_v14 = vmul.f32 0.03125, %v465_v12 }
 0x1e2   : > { %v1618_v17 = vsub.f32 %v429_v44, %v503_v13  ;;  %v1620_v18 = vsub.f32 %v389_v43, %v495_v14 }
 0x1e3   : > { %v469_v19 = vpop.xlane.xlu1 %468  ;;  %v463_v20 = vpop.xlane.xlu0 %462 }
 0x1e4   : > { %v497_v21 = vmul.f32 0.03125, %v469_v19  ;;  %v494_v22 = vmul.f32 0.03125, %v463_v20  ;;  %v532_v23 = vmul.f32 %v1616_v16, %v1620_v18  ;;  %v540_v27 = vmul.f32 %v1616_v16, %v1618_v17 }
 0x1e6   : > { %v1624_v24 = vsub.f32 %v399_v50, %v497_v21  ;;  %v1626_v25 = vsub.f32 %v384_v49, %v494_v22  ;;  %v548_v26 = vmul.f32 %v532_v23, %v532_v23  ;;  %v556_v36 = vmul.f32 %v540_v27, %v540_v27 }
 0x1e7   : > { %v485_v28 = vpop.xlane.xlu1 %484  ;;  %v479_v29 = vpop.xlane.xlu0 %478 }
 0x1e8   : > { %v505_v30 = vmul.f32 0.03125, %v485_v28  ;;  %v502_v31 = vmul.f32 0.03125, %v479_v29  ;;  %565 = vadd.xlane.f32.xlu1 %v548_v26  ;;  %v531_v32 = vmul.f32 %v1616_v16, %v1626_v25  ;;  %v534_v33 = vmul.f32 %v1616_v16, %v1624_v24 }
 0x1ea   : > { %v1634_v34 = vsub.f32 %v439_v53, %v505_v30  ;;  %v1636_v35 = vsub.f32 %v424_v56, %v502_v31  ;;  %v547_v37 = vmul.f32 %v531_v32, %v531_v32  ;;  %v550_v43 = vmul.f32 %v534_v33, %v534_v33 }
 0x1eb   : > { %v467_v38 = vpop.xlane.xlu1 %466  ;;  %v483_v39 = vpop.xlane.xlu0 %482 }
 0x1ec   : > { %v496_v40 = vmul.f32 0.03125, %v467_v38  ;;  %v504_v41 = vmul.f32 0.03125, %v483_v39  ;;  %581 = vadd.xlane.f32.xlu1 %v556_v36  ;;  %563 = vadd.xlane.f32.xlu0 %v547_v37  ;;  %v539_v42 = vmul.f32 %v1616_v16, %v1636_v35  ;;  %v542_v47 = vmul.f32 %v1616_v16, %v1634_v34 }
 0x1ee   : > { %v1640_v44 = vsub.f32 %v394_v61, %v496_v40  ;;  %v1642_v45 = vsub.f32 %v434_v62, %v504_v41  ;;  %v555_v46 = vmul.f32 %v539_v42, %v539_v42  ;;  %v558_v56 = vmul.f32 %v542_v47, %v542_v47 }
 0x1ef   : > { %v473_v48 = vpop.xlane.xlu1 %472  ;;  %v471_v49 = vpop.xlane.xlu0 %470 }
 0x1f0   : > { %v499_v50 = vmul.f32 0.03125, %v473_v48  ;;  %v498_v51 = vmul.f32 0.03125, %v471_v49  ;;  %569 = vadd.xlane.f32.xlu1 %v550_v43  ;;  %579 = vadd.xlane.f32.xlu0 %v555_v46  ;;  %v533_v52 = vmul.f32 %v1616_v16, %v1640_v44  ;;  %v541_v53 = vmul.f32 %v1616_v16, %v1642_v45 }
 0x1f2   : > { %v1651_v54 = vsub.f32 %v1592_v1, %v499_v50  ;;  %v1654_v55 = vsub.f32 %v1594_v2, %v498_v51  ;;  %v549_v57 = vmul.f32 %v533_v52, %v533_v52  ;;  %v557_v63 = vmul.f32 %v541_v53, %v541_v53 }
 0x1f3   : > { %v489_v58 = vpop.xlane.xlu1 %488  ;;  %v487_v59 = vpop.xlane.xlu0 %486 }
 0x1f4   : > { %v507_v60 = vmul.f32 0.03125, %v489_v58  ;;  %v506_v61 = vmul.f32 0.03125, %v487_v59  ;;  %585 = vadd.xlane.f32.xlu1 %v558_v56  ;;  %567 = vadd.xlane.f32.xlu0 %v549_v57  ;;  %v536_v62 = vmul.f32 %v1616_v16, %v1651_v54  ;;  %v535_v9 = vmul.f32 %v1616_v16, %v1654_v55  ;;  %v1693_v59 = vld [vmem:[%s1863_s3] ss:$0 sm:$0xff] }
 0x1f6   : > { %v1659_v0 = vsub.f32 %v1596_v3, %v507_v60  ;;  %v1662_v1 = vsub.f32 %v1600_v4, %v506_v61  ;;  %v552_v2 = vmul.f32 %v536_v62, %v536_v62  ;;  %v551_v20 = vmul.f32 %v535_v9, %v535_v9  ;;  %v1699_v9 = vld [vmem:[%s1864_s4] ss:$0 sm:$0xff] }
 0x1f7   : > { %v477_v10 = vpop.xlane.xlu1 %476  ;;  %v475_v11 = vpop.xlane.xlu0 %474 }
 0x1f8   : > { %v501_v12 = vmul.f32 0.03125, %v477_v10  ;;  %v500_v13 = vmul.f32 0.03125, %v475_v11  ;;  %573 = vadd.xlane.f32.xlu1 %v552_v2  ;;  %583 = vadd.xlane.f32.xlu0 %v557_v63  ;;  %v544_v14 = vmul.f32 %v1616_v16, %v1659_v0  ;;  %v543_v3 = vmul.f32 %v1616_v16, %v1662_v1 }
 0x1fa   : > { %v1671_v15 = vsub.f32 %v1602_v5, %v501_v12  ;;  %v1674_v4 = vsub.f32 %v1606_v6, %v500_v13  ;;  %v560_v19 = vmul.f32 %v544_v14, %v544_v14  ;;  %v559_v28 = vmul.f32 %v543_v3, %v543_v3 }
 0x1fb   : > { %v493_v21 = vpop.xlane.xlu1 %492  ;;  %v491_v22 = vpop.xlane.xlu0 %490 }
 0x1fc   : > { %v509_v23 = vmul.f32 0.03125, %v493_v21  ;;  %v508_v26 = vmul.f32 0.03125, %v491_v22  ;;  %589 = vadd.xlane.f32.xlu1 %v560_v19  ;;  %571 = vadd.xlane.f32.xlu0 %v551_v20  ;;  %v538_v27 = vmul.f32 %v1616_v16, %v1671_v15  ;;  %v537_v30 = vmul.f32 %v1616_v16, %v1674_v4 }
 0x1fe   : > { %v1679_v29 = vsub.f32 %v1608_v7, %v509_v23  ;;  %v1682_v5 = vsub.f32 %v1612_v8, %v508_v26  ;;  %v554_v6 = vmul.f32 %v538_v27, %v538_v27  ;;  %v553_v33 = vmul.f32 %v537_v30, %v537_v30 }
 0x200   : > { %577 = vadd.xlane.f32.xlu1 %v554_v6  ;;  %587 = vadd.xlane.f32.xlu0 %v559_v28  ;;  %v546_v31 = vmul.f32 %v1616_v16, %v1679_v29  ;;  %v545_v36 = vmul.f32 %v1616_v16, %v1682_v5 }
 0x202   : > { %v562_v32 = vmul.f32 %v546_v31, %v546_v31  ;;  %v561_v7 = vmul.f32 %v545_v36, %v545_v36 }
 0x204   : > { %593 = vadd.xlane.f32.xlu1 %v562_v32  ;;  %575 = vadd.xlane.f32.xlu0 %v553_v33 }
 0x208   : > { %591 = vadd.xlane.f32.xlu0 %v561_v7 }
 0x275   : > { %v566_v8 = vpop.xlane.xlu1 %565 }
 0x276   : > { %v596_v37 = vmul.f32 0.03125, %v566_v8 }
 0x278   : > { %v612_v38 = vadd.f32 1e-05, %v596_v37 }
 0x279   : > { %v582_v39 = vpop.xlane.xlu1 %581  ;;  %v564_v40 = vpop.xlane.xlu0 %563 }
 0x27a   : > { %1151 = vrsqrt.f32 %v612_v38  ;;  %v604_v41 = vmul.f32 0.03125, %v582_v39  ;;  %v595_v42 = vmul.f32 0.03125, %v564_v40 }
 0x27c   : > { %v620_v43 = vadd.f32 1e-05, %v604_v41  ;;  %v611_v46 = vadd.f32 1e-05, %v595_v42 }
 0x27d   : > { %v570_v47 = vpop.xlane.xlu1 %569  ;;  %v580_v48 = vpop.xlane.xlu0 %579 }
 0x27e   : > { %1153 = vrsqrt.f32 %v620_v43  ;;  %v598_v49 = vmul.f32 0.03125, %v570_v47  ;;  %v603_v50 = vmul.f32 0.03125, %v580_v48 }
 0x27f   : > { %1155 = vrsqrt.f32 %v611_v46 }
 0x280   : > { %v614_v16 = vadd.f32 1e-05, %v598_v49  ;;  %v619_v51 = vadd.f32 1e-05, %v603_v50 }
 0x281   : > { %v586_v52 = vpop.xlane.xlu1 %585  ;;  %v568_v53 = vpop.xlane.xlu0 %567 }
 0x282   : > { %1157 = vrsqrt.f32 %v614_v16  ;;  %v606_v56 = vmul.f32 0.03125, %v586_v52  ;;  %v597_v57 = vmul.f32 0.03125, %v568_v53 }
 0x283   : > { %1159 = vrsqrt.f32 %v619_v51 }
 0x284   : > { %v1152_v58 = vpop.eup %1151  ;;  %v622_v60 = vadd.f32 1e-05, %v606_v56  ;;  %v613_v61 = vadd.f32 1e-05, %v597_v57 }
 0x285   : > { %v644_v62 = vmul.f32 %v1152_v58, %v1620_v18  ;;  %v574_v63 = vpop.xlane.xlu1 %573  ;;  %v584_v2 = vpop.xlane.xlu0 %583 }
 0x286   : > { %1161 = vrsqrt.f32 %v622_v60  ;;  %v600_v10 = vmul.f32 0.03125, %v574_v63  ;;  %v605_v11 = vmul.f32 0.03125, %v584_v2 }
 0x287   : > { %v667_v12 = vmul.f32 %v1693_v59, %v644_v62  ;;  %1163 = vrsqrt.f32 %v613_v61 }
 0x288   : > { %v1154_v13 = vpop.eup %1153  ;;  %v616_v14 = vadd.f32 1e-05, %v600_v10  ;;  %v621_v3 = vadd.f32 1e-05, %v605_v11 }
 0x289   : > { %v1156_v19 = vpop.eup %1155  ;;  %v1703_v20 = vadd.f32 %v1699_v9, %v667_v12  ;;  %v652_v18 = vmul.f32 %v1154_v13, %v1618_v17  ;;  %v590_v21 = vpop.xlane.xlu1 %589 }
 0x28a   : > { %v572_v22 = vpop.xlane.xlu0 %571  ;;  %v643_v23 = vmul.f32 %v1156_v19, %v1626_v25  ;;  %1165 = vrsqrt.f32 %v616_v14  ;;  %v608_v26 = vmul.f32 0.03125, %v590_v21 }
 0x28b   : > { %v599_v27 = vmul.f32 0.03125, %v572_v22  ;;  %v722_v28 = vmul.f32 0.70710677, %v1703_v20  ;;  %v675_v6 = vmul.f32 %v1693_v59, %v652_v18  ;;  %1167 = vrsqrt.f32 %v621_v3 }
 0x28c   : > { %v1158_v30 = vpop.eup %1157  ;;  %v666_v31 = vmul.f32 %v1693_v59, %v643_v23  ;;  %v624_v32 = vadd.f32 1e-05, %v608_v26  ;;  %v706_v18 = vmul.f32 0.5, %v1703_v20 }
 0x28d   : > { %v615_v33 = vadd.f32 1e-05, %v599_v27  ;;  %v1160_v36 = vpop.eup %1159  ;;  %1169 = verf.f32 %v722_v28  ;;  %v698_v17 = vadd.f32 %v1699_v9, %v675_v6  ;;  %v646_v7 = vmul.f32 %v1158_v30, %v1624_v24  ;;  %v578_v25 = vpop.xlane.xlu1 %577 }
 0x28e   : > { %v1713_v8 = vadd.f32 %v1699_v9, %v666_v31  ;;  %v651_v37 = vmul.f32 %v1160_v36, %v1636_v35  ;;  %1171 = vrsqrt.f32 %v624_v32  ;;  %v602_v38 = vmul.f32 0.03125, %v578_v25  ;;  %v588_v39 = vpop.xlane.xlu0 %587 }
 0x28f   : > { %v730_v40 = vmul.f32 0.70710677, %v698_v17  ;;  %v669_v41 = vmul.f32 %v1693_v59, %v646_v7  ;;  %1173 = vrsqrt.f32 %v615_v33  ;;  %v607_v49 = vmul.f32 0.03125, %v588_v39 }
 0x290   : > { %v1162_v42 = vpop.eup %1161  ;;  %v721_v43 = vmul.f32 0.70710677, %v1713_v8  ;;  %v674_v46 = vmul.f32 %v1693_v59, %v651_v37  ;;  %v618_v47 = vadd.f32 1e-05, %v602_v38  ;;  %v714_v26 = vmul.f32 0.5, %v698_v17 }
 0x291   : > { %v1164_v24 = vpop.eup %1163  ;;  %1175 = verf.f32 %v730_v40  ;;  %v1720_v48 = vadd.f32 %v1699_v9, %v669_v41  ;;  %v654_v35 = vmul.f32 %v1162_v42, %v1634_v34  ;;  %v594_v50 = vpop.xlane.xlu1 %593  ;;  %v623_v34 = vadd.f32 1e-05, %v607_v49 }
 0x292   : > { %1177 = verf.f32 %v721_v43  ;;  %v1724_v16 = vadd.f32 %v1699_v9, %v674_v46  ;;  %v645_v51 = vmul.f32 %v1164_v24, %v1640_v44  ;;  %v610_v52 = vmul.f32 0.03125, %v594_v50  ;;  %v576_v61 = vpop.xlane.xlu0 %575 }
 0x293   : > { %v724_v53 = vmul.f32 0.70710677, %v1720_v48  ;;  %v677_v56 = vmul.f32 %v1693_v59, %v654_v35  ;;  %1179 = vrsqrt.f32 %v618_v47  ;;  %v601_v3 = vmul.f32 0.03125, %v576_v61 }
 0x294   : > { %v1166_v57 = vpop.eup %1165  ;;  %v729_v58 = vmul.f32 0.70710677, %v1724_v16  ;;  %v668_v60 = vmul.f32 %v1693_v59, %v645_v51  ;;  %v626_v11 = vadd.f32 1e-05, %v610_v52  ;;  %v705_v7 = vmul.f32 0.5, %v1713_v8 }
 0x295   : > { %v1168_v62 = vpop.eup %1167  ;;  %1181 = verf.f32 %v724_v53  ;;  %v1732_v63 = vadd.f32 %v1699_v9, %v677_v56  ;;  %v648_v44 = vmul.f32 %v1166_v57, %v1651_v54  ;;  %v617_v36 = vadd.f32 1e-05, %v601_v3 }
 0x296   : > { %1183 = verf.f32 %v729_v58  ;;  %v1736_v2 = vadd.f32 %v1699_v9, %v668_v60  ;;  %v653_v10 = vmul.f32 %v1168_v62, %v1642_v45  ;;  %v592_v30 = vpop.xlane.xlu0 %591  ;;  %v708_v35 = vmul.f32 0.5, %v1720_v48 }
 0x297   : > { %v1170_v12 = vpop.eup %1169  ;;  %v732_v13 = vmul.f32 0.70710677, %v1732_v63  ;;  %v671_v14 = vmul.f32 %v1693_v59, %v648_v44  ;;  %1185 = vrsqrt.f32 %v623_v34  ;;  %v609_v40 = vmul.f32 0.03125, %v592_v30 }
 0x298   : > { %v1172_v19 = vpop.eup %1171  ;;  %v754_v21 = vadd.f32 1.0, %v1170_v12  ;;  %v723_v54 = vmul.f32 0.70710677, %v1736_v2  ;;  %v676_v22 = vmul.f32 %v1693_v59, %v653_v10  ;;  %v713_v53 = vmul.f32 0.5, %v1724_v16 }
 0x299   : > { %v1174_v23 = vpop.eup %1173  ;;  %1187 = verf.f32 %v732_v13  ;;  %v1745_v45 = vadd.f32 %v1699_v9, %v671_v14  ;;  %v656_v27 = vmul.f32 %v1172_v19, %v1659_v0  ;;  %v716_v62 = vmul.f32 0.5, %v1732_v63 }
 0x29a   : > { %v770_v28 = vmul.f32 %v754_v21, %v706_v18  ;;  %1189 = verf.f32 %v723_v54  ;;  %v1749_v6 = vadd.f32 %v1699_v9, %v676_v22  ;;  %v647_v20 = vmul.f32 %v1174_v23, %v1654_v55 }
 0x29b   : > { %v1176_v31 = vpop.eup %1175  ;;  %v726_v32 = vmul.f32 0.70710677, %v1745_v45  ;;  %v679_v33 = vmul.f32 %v1693_v59, %v656_v27  ;;  %1191 = vrsqrt.f32 %v626_v11  ;;  %v707_v12 = vmul.f32 0.5, %v1736_v2 }
 0x29c   : > { %v1178_v17 = vpop.eup %1177  ;;  %786 = vst [vmem:[%s1756_s11 + $0x8] sm:$0xff] %v770_v28  ;;  %v762_v0 = vadd.f32 1.0, %v1176_v31  ;;  %v731_v25 = vmul.f32 0.70710677, %v1749_v6  ;;  %v670_v55 = vmul.f32 %v1693_v59, %v647_v20  ;;  %v710_v63 = vmul.f32 0.5, %v1745_v45 }
 0x29d   : > { %v1180_v37 = vpop.eup %1179  ;;  %v753_v38 = vadd.f32 1.0, %v1178_v17  ;;  %1193 = verf.f32 %v726_v32  ;;  %v702_v39 = vadd.f32 %v1699_v9, %v679_v33  ;;  %v715_v2 = vmul.f32 0.5, %v1749_v6 }
 0x29e   : > { %v778_v41 = vmul.f32 %v762_v0, %v714_v26  ;;  %1195 = verf.f32 %v731_v25  ;;  %v1764_v42 = vadd.f32 %v1699_v9, %v670_v55  ;;  %v650_v43 = vmul.f32 %v1180_v37, %v1671_v15 }
 0x29f   : > { %v1182_v8 = vpop.eup %1181  ;;  %v769_v46 = vmul.f32 %v753_v38, %v705_v7  ;;  %v734_v47 = vmul.f32 0.70710677, %v702_v39  ;;  %1197 = vrsqrt.f32 %v617_v36  ;;  %v625_v15 = vadd.f32 1e-05, %v609_v40 }
 0x2a0   : > { %v1184_v24 = vpop.eup %1183  ;;  %794 = vst [vmem:[%s1756_s11 + $0x48] sm:$0xff] %v778_v41  ;;  %v756_v49 = vadd.f32 1.0, %v1182_v8  ;;  %v725_v50 = vmul.f32 0.70710677, %v1764_v42  ;;  %v673_v51 = vmul.f32 %v1693_v59, %v650_v43  ;;  %v718_v45 = vmul.f32 0.5, %v702_v39 }
 0x2a1   : > { %v1186_v52 = vpop.eup %1185  ;;  %785 = vst [vmem:[%s1756_s11] sm:$0xff] %v769_v46  ;;  %v761_v56 = vadd.f32 1.0, %v1184_v24  ;;  %1199 = verf.f32 %v734_v47  ;;  %v709_v6 = vmul.f32 0.5, %v1764_v42 }
 0x2a2   : > { %v772_v57 = vmul.f32 %v756_v49, %v708_v35  ;;  %1201 = verf.f32 %v725_v50  ;;  %v696_v58 = vadd.f32 %v1699_v9, %v673_v51  ;;  %v655_v48 = vmul.f32 %v1186_v52, %v1662_v1 }
 0x2a3   : > { %v1188_v60 = vpop.eup %1187  ;;  %v777_v34 = vmul.f32 %v761_v56, %v713_v53  ;;  %1203 = vrsqrt.f32 %v625_v15 }
 0x2a4   : > { %v1190_v61 = vpop.eup %1189  ;;  %788 = vst [vmem:[%s1756_s11 + $0x18] sm:$0xff] %v772_v57  ;;  %v764_v44 = vadd.f32 1.0, %v1188_v60  ;;  %v728_v16 = vmul.f32 0.70710677, %v696_v58  ;;  %v678_v10 = vmul.f32 %v1693_v59, %v655_v48  ;;  %v712_v41 = vmul.f32 0.5, %v696_v58 }
 0x2a5   : > { %v1192_v11 = vpop.eup %1191  ;;  %793 = vst [vmem:[%s1756_s11 + $0x40] sm:$0xff] %v777_v34  ;;  %v755_v13 = vadd.f32 1.0, %v1190_v61 }
 0x2a6   : > { %v780_v14 = vmul.f32 %v764_v44, %v716_v62  ;;  %1205 = verf.f32 %v728_v16  ;;  %v701_v1 = vadd.f32 %v1699_v9, %v678_v10  ;;  %v658_v3 = vmul.f32 %v1192_v11, %v1679_v29 }
 0x2a7   : > { %v1194_v19 = vpop.eup %1193  ;;  %v771_v18 = vmul.f32 %v755_v13, %v707_v12 }
 0x2a8   : > { %v1196_v21 = vpop.eup %1195  ;;  %796 = vst [vmem:[%s1756_s11 + $0x58] sm:$0xff] %v780_v14  ;;  %v758_v54 = vadd.f32 1.0, %v1194_v19  ;;  %v733_v22 = vmul.f32 0.70710677, %v701_v1  ;;  %v681_v23 = vmul.f32 %v1693_v59, %v658_v3 }
 0x2a9   : > { %v1198_v26 = vpop.eup %1197  ;;  %787 = vst [vmem:[%s1756_s11 + $0x10] sm:$0xff] %v771_v18  ;;  %v763_v27 = vadd.f32 1.0, %v1196_v21 }
 0x2aa   : > { %v774_v28 = vmul.f32 %v758_v54, %v710_v63  ;;  %1207 = verf.f32 %v733_v22  ;;  %v704_v29 = vadd.f32 %v1699_v9, %v681_v23  ;;  %v649_v20 = vmul.f32 %v1198_v26, %v1674_v4 }
 0x2ab   : > { %v1200_v30 = vpop.eup %1199  ;;  %v779_v31 = vmul.f32 %v763_v27, %v715_v2 }
 0x2ac   : > { %v1202_v32 = vpop.eup %1201  ;;  %790 = vst [vmem:[%s1756_s11 + $0x28] sm:$0xff] %v774_v28  ;;  %v766_v33 = vadd.f32 1.0, %v1200_v30  ;;  %v736_v36 = vmul.f32 0.70710677, %v704_v29  ;;  %v672_v17 = vmul.f32 %v1693_v59, %v649_v20 }
 0x2ad   : > { %v1204_v0 = vpop.eup %1203  ;;  %795 = vst [vmem:[%s1756_s11 + $0x50] sm:$0xff] %v779_v31  ;;  %v757_v7 = vadd.f32 1.0, %v1202_v32 }
 0x2ae   : > { %v782_v25 = vmul.f32 %v766_v33, %v718_v45  ;;  %1209 = verf.f32 %v736_v36  ;;  %v695_v4 = vadd.f32 %v1699_v9, %v672_v17  ;;  %v657_v55 = vmul.f32 %v1204_v0, %v1682_v5 }
 0x2af   : > { %v773_v37 = vmul.f32 %v757_v7, %v709_v6  ;;  %v717_v5 = vmul.f32 0.5, %v701_v1 }
 0x2b0   : > { %v1206_v38 = vpop.eup %1205  ;;  %798 = vst [vmem:[%s1756_s11 + $0x68] sm:$0xff] %v782_v25  ;;  %v727_v39 = vmul.f32 0.70710677, %v695_v4  ;;  %v680_v40 = vmul.f32 %v1693_v59, %v657_v55  ;;  %v720_v59 = vmul.f32 0.5, %v704_v29 }
 0x2b1   : > { %789 = vst [vmem:[%s1756_s11 + $0x20] sm:$0xff] %v773_v37  ;;  %v760_v43 = vadd.f32 1.0, %v1206_v38 }
 0x2b2   : > { %1211 = verf.f32 %v727_v39  ;;  %v703_v42 = vadd.f32 %v1699_v9, %v680_v40  ;;  %v711_v9 = vmul.f32 0.5, %v695_v4 }
 0x2b3   : > { %v776_v8 = vmul.f32 %v760_v43, %v712_v41 }
 0x2b4   : > { %v1208_v46 = vpop.eup %1207  ;;  %v735_v47 = vmul.f32 0.70710677, %v703_v42  ;;  %v719_v57 = vmul.f32 0.5, %v703_v42 }
 0x2b5   : > { %792 = vst [vmem:[%s1756_s11 + $0x38] sm:$0xff] %v776_v8  ;;  %v765_v24 = vadd.f32 1.0, %v1208_v46 }
 0x2b6   : > { %1213 = verf.f32 %v735_v47 }
 0x2b7   : > { %v781_v35 = vmul.f32 %v765_v24, %v717_v5 }
 0x2b8   : > { %v1210_v49 = vpop.eup %1209 }
 0x2b9   : > { %797 = vst [vmem:[%s1756_s11 + $0x60] sm:$0xff] %v781_v35  ;;  %v768_v50 = vadd.f32 1.0, %v1210_v49 }
 0x2bb   : > { %v784_v51 = vmul.f32 %v768_v50, %v720_v59 }
 0x2bc   : > { %v1212_v52 = vpop.eup %1211 }
 0x2bd   : > { %800 = vst [vmem:[%s1756_s11 + $0x78] sm:$0xff] %v784_v51  ;;  %v759_v53 = vadd.f32 1.0, %v1212_v52 }
 0x2bf   : > { %v775_v56 = vmul.f32 %v759_v53, %v711_v9 }
 0x2c0   : > { %v1214_v15 = vpop.eup %1213 }
 0x2c1   : > { %791 = vst [vmem:[%s1756_s11 + $0x30] sm:$0xff] %v775_v56  ;;  %v767_v58 = vadd.f32 1.0, %v1214_v15 }
 0x2c3   : > { %v783_v48 = vmul.f32 %v767_v58, %v719_v57 }
 0x2c5   : > { %799 = vst [vmem:[%s1756_s11 + $0x70] sm:$0xff] %v783_v48 }
 0x2c6   : > { %1286 = shalt.err (!%p1283_p5)
}
 0x2c7   : > { %s1287_s30 = scalar_lea.hbm %s1808_s27, 2048  ;;  %s1291_s10 = scalar_lea.hbm %s1865_s5, 4096 }
 0x2c8   : > { %p1288_p9 = scmp.ne.s32.totalorder %s1808_s27, %s1287_s30  ;;  %p1292_p3 = scmp.lt.u32.totalorder %s1808_s27, %s1865_s5 }
 0x2c9   : > { %p1293_p7 = scmp.lt.u32.totalorder %s1291_s10, %s1287_s30  ;;  %p1295_p4 = scmp.lt.u32.totalorder %s1287_s30, %s1808_s27 }
 0x2ca   : > { %p1289_p1 = pnand %p1288_p9, %p1498_p10 }
 0x2cb   : > { %p1294_p13 = por %p1293_p7, %p1292_p3 }
 0x2cc   : > { %p1290_p2 = pneg %p1289_p1 }
 0x2cd   : > { %p1296_p6 = por %p1295_p4, %p1294_p13 }
 0x2cf   : > { %p1297_p8 = pnand %p1296_p6, %p1290_p2 }
 0x2d1   : > { %1300 = shalt.err (!%p1297_p8)
}
 0x2d2   : > { %s1367_s6 = smov 128   ;;  %s1368_s17 = smov 8  }
 0x2d3   : > { %1079 = dma.vmem_to_hbm [thread:$0]  (%p1498_p10), %s1810_s16, 2048, %s1808_s27, %s802_s7, %s1367_s6, %s1367_s6, %s1368_s17  }
 0x2d4 PF: > { %s832_s13 = sand.u32 1, %s1339_s18   ;;  %p1885_p12 = scmp.ne.s32.totalorder %s1874_s29, 0 }
 0x2d5   : > { %p1886_p11 = scmp.ge.s32.totalorder %s1359_s23, 2  ;;  %s833_s21 = scalar_lea.sflag [#allocation4], %s832_s13 }
 0x2d7   : > { %p1090_p0 = pnand %p1886_p11, %p1885_p12 }
 0x2d9   : > { %1334 = dma.done.wait (!%p1090_p0), %s833_s21, 2048  }
 0x2da   : > { %1336 = vsyncadd (!%p1090_p0), %s833_s21, 4294965248  ;;  %s22_s23 = sadd.s32 1, %s1359_s23   ;;  %s1887_s18 = smov %s1343_s19 }
 0x2db   : > { %p19_p5 = scmp.ge.s32.totalorder %s22_s23, 4   ;;  %s1888_s19 = smov %s1347_s20 }
 0x2dc   : > { %s1889_s20 = smov %s1507_s15  ;;  %s1890_s21 = smov %s1355_s22 }
 0x2dd   : > { %s1891_s22 = smov %s1893_s9  ;;  %21 = sbr.rel (!%p19_p5) target bundleno = 7 (0x7), region = 89 }
 0x2e4   :  { %838 = vsyncpa [#allocation3], 1 }
 0x2e5   :  { %840 = vsyncpa [#allocation3 + $0x1], 1 }
 0x2e6   :  { %841 = vsyncpa [#allocation6], 1 }
 0x2e7   :  { %842 = vsyncpa [#allocation4], 1 }
 0x2e8   :  { %844 = vsyncpa [#allocation4 + $0x1], 1 }

</bundles_post_ra>
